<compile_context>
chip_gen: v7x
topology: tpu7x:2x2x1
jax: 0.10.0
libtpu: 0.0.40
codegen_flags: <defaults>
</compile_context>

<pallas_src>
import functools

import numpy as np
import jax
import jax.numpy as jnp
from jax.experimental import pallas as pl
from jax.experimental.pallas import tpu as pltpu


def _haar_band_matrices(H: int, W: int):
    """Constant separable Haar (periodization) band matrices.

    CH (2*Ho, H): rows [0,Ho) = pairwise sums along H, rows [Ho,2Ho) = diffs.
    CW (W, 2*Wo): cols [0,Wo) = pairwise sums along W, cols [Wo,2Wo) = diffs,
    scaled by 0.5 so CH @ x @ CW carries the exact overall 1/2 normalization.
    """
    Ho, Wo = H // 2, W // 2
    ch = np.zeros((2 * Ho, H), np.float32)
    i = np.arange(Ho)
    ch[i, 2 * i] = 1.0
    ch[i, 2 * i + 1] = 1.0
    ch[Ho + i, 2 * i] = 1.0
    ch[Ho + i, 2 * i + 1] = -1.0

    cw = np.zeros((W, 2 * Wo), np.float32)
    j = np.arange(Wo)
    cw[2 * j, j] = 0.5
    cw[2 * j + 1, j] = 0.5
    cw[2 * j, Wo + j] = 0.5
    cw[2 * j + 1, Wo + j] = -0.5
    return ch, cw


def _dwt2d_haar_kernel(x_ref, ch_ref, cw_ref,
                       ll_ref, lh_ref, hl_ref, hh_ref, *, Ho, Wo):
    """One grid step = one (Bt, C, H, W) slab; W stays the lane dimension."""
    Bt, C = x_ref.shape[0], x_ref.shape[1]
    ch = ch_ref[...]          # (2Ho, H) — hoisted out of the channel loop
    cw = cw_ref[...]          # (W, 2Wo)

    def one(n, carry):
        b = n // C
        c = n % C
        xc = x_ref[b, c]                                             # (H, W)
        # Rows of t: pairwise sums / diffs along H (Haar butterfly via MXU).
        t = jnp.dot(ch, xc, preferred_element_type=jnp.float32)     # (2Ho, W)
        # Columns of y: pairwise sums / diffs along W, scaled by 0.5.
        y = jnp.dot(t, cw, preferred_element_type=jnp.float32)      # (2Ho, 2Wo)
        ll_ref[b, c] = y[:Ho, :Wo]      # 'aa' = cA
        hl_ref[b, c] = y[:Ho, Wo:]      # 'ad' = cV
        lh_ref[b, c] = y[Ho:, :Wo]      # 'da' = cH
        hh_ref[b, c] = y[Ho:, Wo:]      # 'dd' = cD
        return carry

    n_iter = Bt * C
    if n_iter <= 8:                      # tiny slabs: fully static unroll
        for n in range(n_iter):
            one(n, 0)
    else:
        jax.lax.fori_loop(0, n_iter, one, 0)


def _pick_batch_tile(B, per_batch_bytes, target_bytes=1 << 20):
    """Largest divisor of B giving <= ~1 MiB blocks while keeping >= 2 grid
    steps (so v7x's two TensorCores both get work) whenever B > 1."""
    best = 1
    for bt in range(1, B + 1):
        if B % bt:
            continue
        if bt * per_batch_bytes > target_bytes:
            break
        if B > 1 and B // bt < 2:
            break
        best = bt
    return best


def dwt2d_haar(x, batch_tile=None):
    """pywt Haar DWT2 (periodization) of x (B,C,H,W) -> (LL, LH, HL, HH)."""
    x = jnp.asarray(x, jnp.float32)
    B, C, H, W = x.shape
    # TODO(synk): odd H/W periodization wrap-around not implemented (even sizes only).
    assert H % 2 == 0 and W % 2 == 0, "even H, W required"
    Ho, Wo = H // 2, W // 2

    ch_np, cw_np = _haar_band_matrices(H, W)
    ch = jnp.asarray(ch_np)
    cw = jnp.asarray(cw_np)

    if batch_tile is None:
        batch_tile = _pick_batch_tile(B, C * H * W * 4)
    Bt = batch_tile
    assert B % Bt == 0
    grid = (B // Bt,)

    band = jax.ShapeDtypeStruct((B, C, Ho, Wo), jnp.float32)
    x_spec = pl.BlockSpec((Bt, C, H, W), lambda i: (i, 0, 0, 0))
    const2d = lambda shape: pl.BlockSpec(shape, lambda i: (0, 0))
    band_spec = pl.BlockSpec((Bt, C, Ho, Wo), lambda i: (i, 0, 0, 0))

    kernel = functools.partial(_dwt2d_haar_kernel, Ho=Ho, Wo=Wo)
    LL, LH, HL, HH = pl.pallas_call(
        kernel,
        out_shape=(band, band, band, band),
        grid=grid,
        in_specs=[x_spec, const2d((2 * Ho, H)), const2d((W, 2 * Wo))],
        out_specs=(band_spec, band_spec, band_spec, band_spec),
        compiler_params=pltpu.CompilerParams(
            dimension_semantics=("parallel",)),
    )(x, ch, cw)
    return LL, LH, HL, HH


def dwt2d_haar_reference(x):
    """Pure-JAX reference (same pywt periodization Haar band definitions)."""
    a = x[:, :, 0::2, 0::2]
    b = x[:, :, 0::2, 1::2]
    c = x[:, :, 1::2, 0::2]
    d = x[:, :, 1::2, 1::2]
    LL = 0.5 * (a + b + c + d)
    LH = 0.5 * (a + b - c - d)   # pywt cH
    HL = 0.5 * (a - b + c - d)   # pywt cV
    HH = 0.5 * (a - b - c + d)   # pywt cD
    return LL, LH, HL, HH


if __name__ == "__main__":
    B, C, H, W = 2, 4, 16, 16
    x = jax.random.normal(jax.random.PRNGKey(0), (B, C, H, W), jnp.float32)

    out = dwt2d_haar(x)
    out = jax.block_until_ready(out)
    ref = dwt2d_haar_reference(x)

    for o, r, name in zip(out, ref, ("LL", "LH", "HL", "HH")):
        assert o.shape == (B, C, H // 2, W // 2), (name, o.shape)
        err = float(jnp.max(jnp.abs(o - r)))
        assert err < 1e-5, (name, err)
    print("KERNEL_OK")
</pallas_src>

<mosaic_0001>
module attributes {stable_mosaic.version = 11 : i64} {
  func.func @_dwt2d_haar_kernel(%arg0: i32, %arg1: memref<1x4x16x16xf32, #tpu.memory_space<vmem>>, %arg2: memref<16x16xf32, #tpu.memory_space<vmem>>, %arg3: memref<16x16xf32, #tpu.memory_space<vmem>>, %arg4: memref<1x4x8x8xf32, #tpu.memory_space<vmem>>, %arg5: memref<1x4x8x8xf32, #tpu.memory_space<vmem>>, %arg6: memref<1x4x8x8xf32, #tpu.memory_space<vmem>>, %arg7: memref<1x4x8x8xf32, #tpu.memory_space<vmem>>) attributes {dimension_semantics = [#tpu.dimension_semantics<parallel>], iteration_bounds = array<i64: 2>, scalar_prefetch = 0 : i64, scratch_operands = 0 : i64, tpu.core_type = #tpu.core_type<tc>, window_params = [{transform_indices = @transform_0, window_bounds = array<i64: 1, 4, 16, 16>}, {pipeline_mode = #tpu.pipeline_mode<synchronous>, transform_indices = @transform_1, window_bounds = array<i64: 16, 16>}, {pipeline_mode = #tpu.pipeline_mode<synchronous>, transform_indices = @transform_2, window_bounds = array<i64: 16, 16>}, {transform_indices = @transform_3, window_bounds = array<i64: 1, 4, 8, 8>}, {transform_indices = @transform_4, window_bounds = array<i64: 1, 4, 8, 8>}, {transform_indices = @transform_5, window_bounds = array<i64: 1, 4, 8, 8>}, {transform_indices = @transform_6, window_bounds = array<i64: 1, 4, 8, 8>}]} {
    %c0 = arith.constant 0 : index
    %c0_0 = arith.constant 0 : index
    %0 = vector.load %arg2[%c0, %c0_0] : memref<16x16xf32, #tpu.memory_space<vmem>>, vector<16x16xf32>
    %c0_1 = arith.constant 0 : index
    %c0_2 = arith.constant 0 : index
    %1 = vector.load %arg3[%c0_1, %c0_2] : memref<16x16xf32, #tpu.memory_space<vmem>>, vector<16x16xf32>
    %c0_3 = arith.constant 0 : index
    %c0_4 = arith.constant 0 : index
    %c0_5 = arith.constant 0 : index
    %c0_6 = arith.constant 0 : index
    %2 = vector.load %arg1[%c0_3, %c0_4, %c0_5, %c0_6] : memref<1x4x16x16xf32, #tpu.memory_space<vmem>>, vector<1x1x16x16xf32>
    %3 = vector.shape_cast %2 : vector<1x1x16x16xf32> to vector<16x16xf32>
    %cst = arith.constant dense<0.000000e+00> : vector<16x16xf32>
    %4 = tpu.matmul %0, %3, %cst {dimension_numbers = #tpu.dot_dimension_numbers<[1], [0], [0], [1], [0, 0, 1, 1], [], []>} : vector<16x16xf32>, vector<16x16xf32>, vector<16x16xf32> -> vector<16x16xf32>
    %cst_7 = arith.constant dense<0.000000e+00> : vector<16x16xf32>
    %5 = tpu.matmul %4, %1, %cst_7 {dimension_numbers = #tpu.dot_dimension_numbers<[1], [0], [0], [1], [0, 0, 1, 1], [], []>} : vector<16x16xf32>, vector<16x16xf32>, vector<16x16xf32> -> vector<16x16xf32>
    %6 = vector.extract_strided_slice %5 {offsets = [0, 0], sizes = [8, 8], strides = [1, 1]} : vector<16x16xf32> to vector<8x8xf32>
    %c0_8 = arith.constant 0 : index
    %c0_9 = arith.constant 0 : index
    %c0_10 = arith.constant 0 : index
    %c0_11 = arith.constant 0 : index
    %7 = vector.load %arg4[%c0_8, %c0_9, %c0_10, %c0_11] : memref<1x4x8x8xf32, #tpu.memory_space<vmem>>, vector<1x1x8x8xf32>
    %8 = vector.shape_cast %7 : vector<1x1x8x8xf32> to vector<8x8xf32>
    %9 = vector.shape_cast %6 : vector<8x8xf32> to vector<1x1x8x8xf32>
    tpu.vector_store %arg4[%c0_8, %c0_9, %c0_10, %c0_11], %9 {strides = array<i32>} : memref<1x4x8x8xf32, #tpu.memory_space<vmem>>, vector<1x1x8x8xf32>,
    %10 = vector.extract_strided_slice %5 {offsets = [0, 8], sizes = [8, 8], strides = [1, 1]} : vector<16x16xf32> to vector<8x8xf32>
    %c0_12 = arith.constant 0 : index
    %c0_13 = arith.constant 0 : index
    %c0_14 = arith.constant 0 : index
    %c0_15 = arith.constant 0 : index
    %11 = vector.load %arg6[%c0_12, %c0_13, %c0_14, %c0_15] : memref<1x4x8x8xf32, #tpu.memory_space<vmem>>, vector<1x1x8x8xf32>
    %12 = vector.shape_cast %11 : vector<1x1x8x8xf32> to vector<8x8xf32>
    %13 = vector.shape_cast %10 : vector<8x8xf32> to vector<1x1x8x8xf32>
    tpu.vector_store %arg6[%c0_12, %c0_13, %c0_14, %c0_15], %13 {strides = array<i32>} : memref<1x4x8x8xf32, #tpu.memory_space<vmem>>, vector<1x1x8x8xf32>,
    %14 = vector.extract_strided_slice %5 {offsets = [8, 0], sizes = [8, 8], strides = [1, 1]} : vector<16x16xf32> to vector<8x8xf32>
    %c0_16 = arith.constant 0 : index
    %c0_17 = arith.constant 0 : index
    %c0_18 = arith.constant 0 : index
    %c0_19 = arith.constant 0 : index
    %15 = vector.load %arg5[%c0_16, %c0_17, %c0_18, %c0_19] : memref<1x4x8x8xf32, #tpu.memory_space<vmem>>, vector<1x1x8x8xf32>
    %16 = vector.shape_cast %15 : vector<1x1x8x8xf32> to vector<8x8xf32>
    %17 = vector.shape_cast %14 : vector<8x8xf32> to vector<1x1x8x8xf32>
    tpu.vector_store %arg5[%c0_16, %c0_17, %c0_18, %c0_19], %17 {strides = array<i32>} : memref<1x4x8x8xf32, #tpu.memory_space<vmem>>, vector<1x1x8x8xf32>,
    %18 = vector.extract_strided_slice %5 {offsets = [8, 8], sizes = [8, 8], strides = [1, 1]} : vector<16x16xf32> to vector<8x8xf32>
    %c0_20 = arith.constant 0 : index
    %c0_21 = arith.constant 0 : index
    %c0_22 = arith.constant 0 : index
    %c0_23 = arith.constant 0 : index
    %19 = vector.load %arg7[%c0_20, %c0_21, %c0_22, %c0_23] : memref<1x4x8x8xf32, #tpu.memory_space<vmem>>, vector<1x1x8x8xf32>
    %20 = vector.shape_cast %19 : vector<1x1x8x8xf32> to vector<8x8xf32>
    %21 = vector.shape_cast %18 : vector<8x8xf32> to vector<1x1x8x8xf32>
    tpu.vector_store %arg7[%c0_20, %c0_21, %c0_22, %c0_23], %21 {strides = array<i32>} : memref<1x4x8x8xf32, #tpu.memory_space<vmem>>, vector<1x1x8x8xf32>,
    %c0_24 = arith.constant 0 : index
    %c1 = arith.constant 1 : index
    %c0_25 = arith.constant 0 : index
    %c0_26 = arith.constant 0 : index
    %22 = vector.load %arg1[%c0_24, %c1, %c0_25, %c0_26] : memref<1x4x16x16xf32, #tpu.memory_space<vmem>>, vector<1x1x16x16xf32>
    %23 = vector.shape_cast %22 : vector<1x1x16x16xf32> to vector<16x16xf32>
    %cst_27 = arith.constant dense<0.000000e+00> : vector<16x16xf32>
    %24 = tpu.matmul %0, %23, %cst_27 {dimension_numbers = #tpu.dot_dimension_numbers<[1], [0], [0], [1], [0, 0, 1, 1], [], []>} : vector<16x16xf32>, vector<16x16xf32>, vector<16x16xf32> -> vector<16x16xf32>
    %cst_28 = arith.constant dense<0.000000e+00> : vector<16x16xf32>
    %25 = tpu.matmul %24, %1, %cst_28 {dimension_numbers = #tpu.dot_dimension_numbers<[1], [0], [0], [1], [0, 0, 1, 1], [], []>} : vector<16x16xf32>, vector<16x16xf32>, vector<16x16xf32> -> vector<16x16xf32>
    %26 = vector.extract_strided_slice %25 {offsets = [0, 0], sizes = [8, 8], strides = [1, 1]} : vector<16x16xf32> to vector<8x8xf32>
    %c0_29 = arith.constant 0 : index
    %c1_30 = arith.constant 1 : index
    %c0_31 = arith.constant 0 : index
    %c0_32 = arith.constant 0 : index
    %27 = vector.load %arg4[%c0_29, %c1_30, %c0_31, %c0_32] : memref<1x4x8x8xf32, #tpu.memory_space<vmem>>, vector<1x1x8x8xf32>
    %28 = vector.shape_cast %27 : vector<1x1x8x8xf32> to vector<8x8xf32>
    %29 = vector.shape_cast %26 : vector<8x8xf32> to vector<1x1x8x8xf32>
    tpu.vector_store %arg4[%c0_29, %c1_30, %c0_31, %c0_32], %29 {strides = array<i32>} : memref<1x4x8x8xf32, #tpu.memory_space<vmem>>, vector<1x1x8x8xf32>,
    %30 = vector.extract_strided_slice %25 {offsets = [0, 8], sizes = [8, 8], strides = [1, 1]} : vector<16x16xf32> to vector<8x8xf32>
    %c0_33 = arith.constant 0 : index
    %c1_34 = arith.constant 1 : index
    %c0_35 = arith.constant 0 : index
    %c0_36 = arith.constant 0 : index
    %31 = vector.load %arg6[%c0_33, %c1_34, %c0_35, %c0_36] : memref<1x4x8x8xf32, #tpu.memory_space<vmem>>, vector<1x1x8x8xf32>
    %32 = vector.shape_cast %31 : vector<1x1x8x8xf32> to vector<8x8xf32>
    %33 = vector.shape_cast %30 : vector<8x8xf32> to vector<1x1x8x8xf32>
    tpu.vector_store %arg6[%c0_33, %c1_34, %c0_35, %c0_36], %33 {strides = array<i32>} : memref<1x4x8x8xf32, #tpu.memory_space<vmem>>, vector<1x1x8x8xf32>,
    %34 = vector.extract_strided_slice %25 {offsets = [8, 0], sizes = [8, 8], strides = [1, 1]} : vector<16x16xf32> to vector<8x8xf32>
    %c0_37 = arith.constant 0 : index
    %c1_38 = arith.constant 1 : index
    %c0_39 = arith.constant 0 : index
    %c0_40 = arith.constant 0 : index
    %35 = vector.load %arg5[%c0_37, %c1_38, %c0_39, %c0_40] : memref<1x4x8x8xf32, #tpu.memory_space<vmem>>, vector<1x1x8x8xf32>
    %36 = vector.shape_cast %35 : vector<1x1x8x8xf32> to vector<8x8xf32>
    %37 = vector.shape_cast %34 : vector<8x8xf32> to vector<1x1x8x8xf32>
    tpu.vector_store %arg5[%c0_37, %c1_38, %c0_39, %c0_40], %37 {strides = array<i32>} : memref<1x4x8x8xf32, #tpu.memory_space<vmem>>, vector<1x1x8x8xf32>,
    %38 = vector.extract_strided_slice %25 {offsets = [8, 8], sizes = [8, 8], strides = [1, 1]} : vector<16x16xf32> to vector<8x8xf32>
    %c0_41 = arith.constant 0 : index
    %c1_42 = arith.constant 1 : index
    %c0_43 = arith.constant 0 : index
    %c0_44 = arith.constant 0 : index
    %39 = vector.load %arg7[%c0_41, %c1_42, %c0_43, %c0_44] : memref<1x4x8x8xf32, #tpu.memory_space<vmem>>, vector<1x1x8x8xf32>
    %40 = vector.shape_cast %39 : vector<1x1x8x8xf32> to vector<8x8xf32>
    %41 = vector.shape_cast %38 : vector<8x8xf32> to vector<1x1x8x8xf32>
    tpu.vector_store %arg7[%c0_41, %c1_42, %c0_43, %c0_44], %41 {strides = array<i32>} : memref<1x4x8x8xf32, #tpu.memory_space<vmem>>, vector<1x1x8x8xf32>,
    %c0_45 = arith.constant 0 : index
    %c2 = arith.constant 2 : index
    %c0_46 = arith.constant 0 : index
    %c0_47 = arith.constant 0 : index
    %42 = vector.load %arg1[%c0_45, %c2, %c0_46, %c0_47] : memref<1x4x16x16xf32, #tpu.memory_space<vmem>>, vector<1x1x16x16xf32>
    %43 = vector.shape_cast %42 : vector<1x1x16x16xf32> to vector<16x16xf32>
    %cst_48 = arith.constant dense<0.000000e+00> : vector<16x16xf32>
    %44 = tpu.matmul %0, %43, %cst_48 {dimension_numbers = #tpu.dot_dimension_numbers<[1], [0], [0], [1], [0, 0, 1, 1], [], []>} : vector<16x16xf32>, vector<16x16xf32>, vector<16x16xf32> -> vector<16x16xf32>
    %cst_49 = arith.constant dense<0.000000e+00> : vector<16x16xf32>
    %45 = tpu.matmul %44, %1, %cst_49 {dimension_numbers = #tpu.dot_dimension_numbers<[1], [0], [0], [1], [0, 0, 1, 1], [], []>} : vector<16x16xf32>, vector<16x16xf32>, vector<16x16xf32> -> vector<16x16xf32>
    %46 = vector.extract_strided_slice %45 {offsets = [0, 0], sizes = [8, 8], strides = [1, 1]} : vector<16x16xf32> to vector<8x8xf32>
    %c0_50 = arith.constant 0 : index
    %c2_51 = arith.constant 2 : index
    %c0_52 = arith.constant 0 : index
    %c0_53 = arith.constant 0 : index
    %47 = vector.load %arg4[%c0_50, %c2_51, %c0_52, %c0_53] : memref<1x4x8x8xf32, #tpu.memory_space<vmem>>, vector<1x1x8x8xf32>
    %48 = vector.shape_cast %47 : vector<1x1x8x8xf32> to vector<8x8xf32>
    %49 = vector.shape_cast %46 : vector<8x8xf32> to vector<1x1x8x8xf32>
    tpu.vector_store %arg4[%c0_50, %c2_51, %c0_52, %c0_53], %49 {strides = array<i32>} : memref<1x4x8x8xf32, #tpu.memory_space<vmem>>, vector<1x1x8x8xf32>,
    %50 = vector.extract_strided_slice %45 {offsets = [0, 8], sizes = [8, 8], strides = [1, 1]} : vector<16x16xf32> to vector<8x8xf32>
    %c0_54 = arith.constant 0 : index
    %c2_55 = arith.constant 2 : index
    %c0_56 = arith.constant 0 : index
    %c0_57 = arith.constant 0 : index
    %51 = vector.load %arg6[%c0_54, %c2_55, %c0_56, %c0_57] : memref<1x4x8x8xf32, #tpu.memory_space<vmem>>, vector<1x1x8x8xf32>
    %52 = vector.shape_cast %51 : vector<1x1x8x8xf32> to vector<8x8xf32>
    %53 = vector.shape_cast %50 : vector<8x8xf32> to vector<1x1x8x8xf32>
    tpu.vector_store %arg6[%c0_54, %c2_55, %c0_56, %c0_57], %53 {strides = array<i32>} : memref<1x4x8x8xf32, #tpu.memory_space<vmem>>, vector<1x1x8x8xf32>,
    %54 = vector.extract_strided_slice %45 {offsets = [8, 0], sizes = [8, 8], strides = [1, 1]} : vector<16x16xf32> to vector<8x8xf32>
    %c0_58 = arith.constant 0 : index
    %c2_59 = arith.constant 2 : index
    %c0_60 = arith.constant 0 : index
    %c0_61 = arith.constant 0 : index
    %55 = vector.load %arg5[%c0_58, %c2_59, %c0_60, %c0_61] : memref<1x4x8x8xf32, #tpu.memory_space<vmem>>, vector<1x1x8x8xf32>
    %56 = vector.shape_cast %55 : vector<1x1x8x8xf32> to vector<8x8xf32>
    %57 = vector.shape_cast %54 : vector<8x8xf32> to vector<1x1x8x8xf32>
    tpu.vector_store %arg5[%c0_58, %c2_59, %c0_60, %c0_61], %57 {strides = array<i32>} : memref<1x4x8x8xf32, #tpu.memory_space<vmem>>, vector<1x1x8x8xf32>,
    %58 = vector.extract_strided_slice %45 {offsets = [8, 8], sizes = [8, 8], strides = [1, 1]} : vector<16x16xf32> to vector<8x8xf32>
    %c0_62 = arith.constant 0 : index
    %c2_63 = arith.constant 2 : index
    %c0_64 = arith.constant 0 : index
    %c0_65 = arith.constant 0 : index
    %59 = vector.load %arg7[%c0_62, %c2_63, %c0_64, %c0_65] : memref<1x4x8x8xf32, #tpu.memory_space<vmem>>, vector<1x1x8x8xf32>
    %60 = vector.shape_cast %59 : vector<1x1x8x8xf32> to vector<8x8xf32>
    %61 = vector.shape_cast %58 : vector<8x8xf32> to vector<1x1x8x8xf32>
    tpu.vector_store %arg7[%c0_62, %c2_63, %c0_64, %c0_65], %61 {strides = array<i32>} : memref<1x4x8x8xf32, #tpu.memory_space<vmem>>, vector<1x1x8x8xf32>,
    %c0_66 = arith.constant 0 : index
    %c3 = arith.constant 3 : index
    %c0_67 = arith.constant 0 : index
    %c0_68 = arith.constant 0 : index
    %62 = vector.load %arg1[%c0_66, %c3, %c0_67, %c0_68] : memref<1x4x16x16xf32, #tpu.memory_space<vmem>>, vector<1x1x16x16xf32>
    %63 = vector.shape_cast %62 : vector<1x1x16x16xf32> to vector<16x16xf32>
    %cst_69 = arith.constant dense<0.000000e+00> : vector<16x16xf32>
    %64 = tpu.matmul %0, %63, %cst_69 {dimension_numbers = #tpu.dot_dimension_numbers<[1], [0], [0], [1], [0, 0, 1, 1], [], []>} : vector<16x16xf32>, vector<16x16xf32>, vector<16x16xf32> -> vector<16x16xf32>
    %cst_70 = arith.constant dense<0.000000e+00> : vector<16x16xf32>
    %65 = tpu.matmul %64, %1, %cst_70 {dimension_numbers = #tpu.dot_dimension_numbers<[1], [0], [0], [1], [0, 0, 1, 1], [], []>} : vector<16x16xf32>, vector<16x16xf32>, vector<16x16xf32> -> vector<16x16xf32>
    %66 = vector.extract_strided_slice %65 {offsets = [0, 0], sizes = [8, 8], strides = [1, 1]} : vector<16x16xf32> to vector<8x8xf32>
    %c0_71 = arith.constant 0 : index
    %c3_72 = arith.constant 3 : index
    %c0_73 = arith.constant 0 : index
    %c0_74 = arith.constant 0 : index
    %67 = vector.load %arg4[%c0_71, %c3_72, %c0_73, %c0_74] : memref<1x4x8x8xf32, #tpu.memory_space<vmem>>, vector<1x1x8x8xf32>
    %68 = vector.shape_cast %67 : vector<1x1x8x8xf32> to vector<8x8xf32>
    %69 = vector.shape_cast %66 : vector<8x8xf32> to vector<1x1x8x8xf32>
    tpu.vector_store %arg4[%c0_71, %c3_72, %c0_73, %c0_74], %69 {strides = array<i32>} : memref<1x4x8x8xf32, #tpu.memory_space<vmem>>, vector<1x1x8x8xf32>,
    %70 = vector.extract_strided_slice %65 {offsets = [0, 8], sizes = [8, 8], strides = [1, 1]} : vector<16x16xf32> to vector<8x8xf32>
    %c0_75 = arith.constant 0 : index
    %c3_76 = arith.constant 3 : index
    %c0_77 = arith.constant 0 : index
    %c0_78 = arith.constant 0 : index
    %71 = vector.load %arg6[%c0_75, %c3_76, %c0_77, %c0_78] : memref<1x4x8x8xf32, #tpu.memory_space<vmem>>, vector<1x1x8x8xf32>
    %72 = vector.shape_cast %71 : vector<1x1x8x8xf32> to vector<8x8xf32>
    %73 = vector.shape_cast %70 : vector<8x8xf32> to vector<1x1x8x8xf32>
    tpu.vector_store %arg6[%c0_75, %c3_76, %c0_77, %c0_78], %73 {strides = array<i32>} : memref<1x4x8x8xf32, #tpu.memory_space<vmem>>, vector<1x1x8x8xf32>,
    %74 = vector.extract_strided_slice %65 {offsets = [8, 0], sizes = [8, 8], strides = [1, 1]} : vector<16x16xf32> to vector<8x8xf32>
    %c0_79 = arith.constant 0 : index
    %c3_80 = arith.constant 3 : index
    %c0_81 = arith.constant 0 : index
    %c0_82 = arith.constant 0 : index
    %75 = vector.load %arg5[%c0_79, %c3_80, %c0_81, %c0_82] : memref<1x4x8x8xf32, #tpu.memory_space<vmem>>, vector<1x1x8x8xf32>
    %76 = vector.shape_cast %75 : vector<1x1x8x8xf32> to vector<8x8xf32>
    %77 = vector.shape_cast %74 : vector<8x8xf32> to vector<1x1x8x8xf32>
    tpu.vector_store %arg5[%c0_79, %c3_80, %c0_81, %c0_82], %77 {strides = array<i32>} : memref<1x4x8x8xf32, #tpu.memory_space<vmem>>, vector<1x1x8x8xf32>,
    %78 = vector.extract_strided_slice %65 {offsets = [8, 8], sizes = [8, 8], strides = [1, 1]} : vector<16x16xf32> to vector<8x8xf32>
    %c0_83 = arith.constant 0 : index
    %c3_84 = arith.constant 3 : index
    %c0_85 = arith.constant 0 : index
    %c0_86 = arith.constant 0 : index
    %79 = vector.load %arg7[%c0_83, %c3_84, %c0_85, %c0_86] : memref<1x4x8x8xf32, #tpu.memory_space<vmem>>, vector<1x1x8x8xf32>
    %80 = vector.shape_cast %79 : vector<1x1x8x8xf32> to vector<8x8xf32>
    %81 = vector.shape_cast %78 : vector<8x8xf32> to vector<1x1x8x8xf32>
    tpu.vector_store %arg7[%c0_83, %c3_84, %c0_85, %c0_86], %81 {strides = array<i32>} : memref<1x4x8x8xf32, #tpu.memory_space<vmem>>, vector<1x1x8x8xf32>,
    return
  }
  func.func @transform_0(%arg0: i32) -> (i32, i32, i32, i32) {
    %c0_i32 = arith.constant 0 : i32
    %c0_i32_0 = arith.constant 0 : i32
    %c0_i32_1 = arith.constant 0 : i32
    %c0_i32_2 = arith.constant 0 : i32
    return %arg0, %c0_i32, %c0_i32_0, %c0_i32_1 : i32, i32, i32, i32
  }
  func.func @transform_1(%arg0: i32) -> (i32, i32) {
    %c0_i32 = arith.constant 0 : i32
    %c0_i32_0 = arith.constant 0 : i32
    %c0_i32_1 = arith.constant 0 : i32
    return %c0_i32, %c0_i32_0 : i32, i32
  }
  func.func @transform_2(%arg0: i32) -> (i32, i32) {
    %c0_i32 = arith.constant 0 : i32
    %c0_i32_0 = arith.constant 0 : i32
    %c0_i32_1 = arith.constant 0 : i32
    return %c0_i32, %c0_i32_0 : i32, i32
  }
  func.func @transform_3(%arg0: i32) -> (i32, i32, i32, i32) {
    %c0_i32 = arith.constant 0 : i32
    %c0_i32_0 = arith.constant 0 : i32
    %c0_i32_1 = arith.constant 0 : i32
    %c0_i32_2 = arith.constant 0 : i32
    return %arg0, %c0_i32, %c0_i32_0, %c0_i32_1 : i32, i32, i32, i32
  }
  func.func @transform_4(%arg0: i32) -> (i32, i32, i32, i32) {
    %c0_i32 = arith.constant 0 : i32
    %c0_i32_0 = arith.constant 0 : i32
    %c0_i32_1 = arith.constant 0 : i32
    %c0_i32_2 = arith.constant 0 : i32
    return %arg0, %c0_i32, %c0_i32_0, %c0_i32_1 : i32, i32, i32, i32
  }
  func.func @transform_5(%arg0: i32) -> (i32, i32, i32, i32) {
    %c0_i32 = arith.constant 0 : i32
    %c0_i32_0 = arith.constant 0 : i32
    %c0_i32_1 = arith.constant 0 : i32
    %c0_i32_2 = arith.constant 0 : i32
    return %arg0, %c0_i32, %c0_i32_0, %c0_i32_1 : i32, i32, i32, i32
  }
  func.func @transform_6(%arg0: i32) -> (i32, i32, i32, i32) {
    %c0_i32 = arith.constant 0 : i32
    %c0_i32_0 = arith.constant 0 : i32
    %c0_i32_1 = arith.constant 0 : i32
    %c0_i32_2 = arith.constant 0 : i32
    return %arg0, %c0_i32, %c0_i32_0, %c0_i32_1 : i32, i32, i32, i32
  }
}

</mosaic_0001>

<bundles_post_ra>
// kernel: tpu_custom_call.1
= control target key start
LH: loop header
LB: loop body
LE: loop exit
PB: predicated region body
PF: predicated region fallthrough
CT: control target
= control target key end

     0   :  { %s2284_s0 = inlined_call_operand.hbm [shape: f32[2,4,16,16], index: 0, kind: input, shape index: {}]   ;;  %s2285_s1 = inlined_call_operand.hbm [shape: f32[16,16], index: 1, kind: input, shape index: {}]   ;;  %s2286_s2 = inlined_call_operand.hbm [shape: f32[16,16], index: 2, kind: input, shape index: {}]   ;;  %s2287_s3 = inlined_call_operand.hbm [shape: f32[2,4,8,8], index: 3, kind: output, shape index: {0}]   ;;  %s2288_s4 = inlined_call_operand.hbm [shape: f32[2,4,8,8], index: 4, kind: output, shape index: {1}]   ;;  %s2289_s5 = inlined_call_operand.hbm [shape: f32[2,4,8,8], index: 5, kind: output, shape index: {2}]   ;;  %s2290_s6 = inlined_call_operand.hbm [shape: f32[2,4,8,8], index: 6, kind: output, shape index: {3}]  }
   0x1   :  { %2296 = sst [smem:[#allocation19_spill]] %s2284_s0 }
   0x2   :  { %12 = vsyncpa [#allocation3], 0 }
   0x3   :  { %14 = vsyncpa [#allocation3 + $0x1], 0 }
   0x4   :  { %15 = vsyncpa [#allocation6], 0 }
   0x5   :  { %16 = vsyncpa [#allocation4], 0 }
   0x6   :  { %18 = vsyncpa [#allocation4 + $0x1], 0 }
   0x7   :  { %19 = vsyncpa [#allocation10], 0 }
   0x8   :  { %21 = vsyncpa [#allocation10 + $0x1], 0 }
   0x9   :  { %22 = vsyncpa [#allocation13], 0 }
   0xa   :  { %24 = vsyncpa [#allocation13 + $0x1], 0  ;;  %s1869_s21 = smov 0   ;;  %s1871_s22 = smov 0  }
   0xb   :  { %s1873_s23 = smov 0   ;;  %s1875_s24 = smov 0  }
   0xc LB: > { %s1890_s25 = sadd.s32 4294967295, %s1820_s24   ;;  %s2292_s26 = sadd.s32 4294967294, %s1820_s24   ;;  %s1820_s24 = sphi %s1875_s24, %s2316_s24   ;;  %s1816_s23 = sphi %s1873_s23, %s2315_s23   ;;  %s1812_s22 = sphi %s1871_s22, %s2314_s22   ;;  %s1808_s21 = sphi %s1869_s21, %s2313_s21  }
   0xd   : > { %p50_p0 = scmp.ne.s32.totalorder %s1812_s22, %s1808_s21  ;;  %p2291_p1 = scmp.eq.s32.totalorder %s1890_s25, 0 }
   0xe   : > { %p122_p3 = scmp.eq.s32.totalorder %s2292_s26, 1  ;;  %p1297_p5 = scmp.ge.s32.totalorder %s1820_s24, 1 }
   0xf   : > { %p1901_p4 = por %p2291_p1, %p50_p0  ;;  %p207_p7 = scmp.lt.s32.totalorder %s1820_s24, 3 }
  0x10   : > { %p1906_p6 = por %p122_p3, %p50_p0  ;;  %s1822_s30 = smov [#allocation5]  }
  0x11   : > { %s2297_s27 = scalar_select %p1901_p4, 1, 0 }
  0x12   : > { %s2298_s28 = scalar_select %p1906_p6, 1, 0 }
  0x13   : > { %p1911_p8 = pnand %p1297_p5, %p207_p7  ;;  %s219_s7 = sshll.u32 %s1822_s30, 4  ;;  %s1915_s7 = int_to_ptr.vmem [resolvable:$true] %s219_s7 }
  0x14   : > { %s1823_s9 = smov [#allocation7]   ;;  %s1572_s13 = scalar_lea.hbm %s2285_s1, 256 }
  0x15   : > { %p1503_p9 = pneg %p1911_p8  ;;  %s232_s10 = sshll.u32 %s1823_s9, 4  ;;  %s1926_s10 = int_to_ptr.vmem [resolvable:$true] %s232_s10 }
  0x16   : > { %p1573_p12 = scmp.ne.s32.totalorder %s2285_s1, %s1572_s13  ;;  %p1579_p5 = scmp.lt.u32.totalorder %s1572_s13, %s2285_s1 }
  0x17   : > { %p1922_p11 = pnand %p1503_p9, %p2291_p1 }
  0x19   : > { %p1574_p13 = pneg %p1922_p11 }
  0x1b   : > { %p1575_p0 = pnand %p1574_p13, %p1573_p12 }
  0x1d   : > { %p1576_p3 = pneg %p1575_p0 }
  0x1f   : > { %p1581_p7 = pnand %p1579_p5, %p1576_p3 }
  0x21   : > { %1584 = shalt.err (!%p1581_p7)
}
  0x22   : > { %s1585_s18 = scalar_lea.vmem %s1915_s7, 256  ;;  %p1593_p2 = scmp.lt.s32.totalorder %s1915_s7, %s1915_s7 }
  0x23   : > { %p1586_p9 = scmp.ne.s32.totalorder %s1915_s7, %s1585_s18  ;;  %p1594_p12 = scmp.lt.s32.totalorder %s1585_s18, %s1585_s18 }
  0x25   : > { %p1588_p10 = pnand %p1586_p9, %p1574_p13  ;;  %p1595_p0 = por %p1594_p12, %p1593_p2 }
  0x27   : > { %p1589_p1 = pneg %p1588_p10 }
  0x29   : > { %p1596_p6 = pnand %p1595_p0, %p1589_p1 }
  0x2b   : > { %1599 = shalt.err (!%p1596_p6)
}
  0x2c   : > { %s1824_s19 = smov 128   ;;  %s1825_s20 = smov 8  }
  0x2d   : > { %1506 = dma.hbm_to_vmem [thread:$0]  (!%p1922_p11), %s2285_s1, 256, %s1915_s7, [#allocation6], %s1824_s19, %s1824_s19, %s1825_s20  }
  0x2e   : > { %s1600_s13 = scalar_lea.hbm %s2286_s2, 256 }
  0x2f   : > { %p1601_p1 = scmp.ne.s32.totalorder %s2286_s2, %s1600_s13  ;;  %p1607_p10 = scmp.lt.u32.totalorder %s1600_s13, %s2286_s2 }
  0x31   : > { %p1603_p2 = pnand %p1601_p1, %p1574_p13 }
  0x33   : > { %p1604_p6 = pneg %p1603_p2 }
  0x35   : > { %p1609_p3 = pnand %p1607_p10, %p1604_p6 }
  0x37   : > { %1612 = shalt.err (!%p1609_p3)
}
  0x38   : > { %s1613_s7 = scalar_lea.vmem %s1926_s10, 256  ;;  %p1621_p12 = scmp.lt.s32.totalorder %s1926_s10, %s1926_s10 }
  0x39   : > { %p1614_p5 = scmp.ne.s32.totalorder %s1926_s10, %s1613_s7  ;;  %p1622_p0 = scmp.lt.s32.totalorder %s1613_s7, %s1613_s7 }
  0x3b   : > { %p1616_p7 = pnand %p1614_p5, %p1574_p13  ;;  %p1623_p1 = por %p1622_p0, %p1621_p12 }
  0x3d   : > { %p1617_p9 = pneg %p1616_p7 }
  0x3f   : > { %p1624_p2 = pnand %p1623_p1, %p1617_p9 }
  0x41   : > { %1627 = shalt.err (!%p1624_p2)
}
  0x42   : > { %1509 = dma.hbm_to_vmem [thread:$0]  (!%p1922_p11), %s2286_s2, 256, %s1926_s10, [#allocation6], %s1824_s19, %s1824_s19, %s1825_s20  }
  0x43   : > { %s1987_s8 = sadd.s32 1, %s1820_s24   ;;  %s37_s9 = sadd.s32 1, %s1816_s23 }
  0x44   : > { %s34_s11 = ssub.s32 %s1820_s24, %s1987_s8  ;;  %p44_p13 = scmp.ne.s32.totalorder %s1816_s23, %s1812_s22 }
  0x45   : > { %p35_p6 = scmp.eq.s32.totalorder %s34_s11, 0  ;;  %p45_p10 = scmp.eq.s32.totalorder %s1820_s24, 0 }
  0x46   : > { %p2301_p3 = scmp.eq.s32.totalorder %s1890_s25, 1  ;;  %p1529_p7 = scmp.lt.s32.totalorder %s1820_s24, 2 }
  0x47   : > { %s2003_s13 = scalar_select %p35_p6, %s1816_s23, %s37_s9  }
  0x48   : > { %p1997_p5 = por %p2301_p3, %p44_p13  ;;  %p46_p9 = por %p45_p10, %p44_p13 }
  0x49   : > { %s246_s14 = sand.u32 1, %s1816_s23   ;;  %s1360_s10 = sshll.u32 %s1820_s24, 10 }
  0x4a   : > { %s2302_s12 = scalar_select %p1997_p5, 1, 0 }
  0x4b   : > { %s1301_s15 = sshll.u32 %s246_s14, 6  ;;  %s2303_s0 = sld [smem:[#allocation19_spill]] }
  0x4c   : > { %s250_s18 = scalar_lea.vmem [#allocation2], %s1301_s15  ;;  %p2014_p11 = pnand %p1529_p7, %p46_p9 }
  0x4d   : > { %s257_s30 = sshll.u32 %s250_s18, 4  ;;  %s2018_s11 = scalar_lea.sflag [#allocation3], %s246_s14  ;;  %s2012_s30 = int_to_ptr.vmem [resolvable:$true] %s257_s30 }
  0x4e   : > { %p1630_p0 = pneg %p2014_p11 }
  0x51   : > { %s2010_s7 = scalar_lea.hbm %s2303_s0, %s1360_s10  ;;  %s1633_s16 = scalar_lea.hbm %s2303_s0, 2048 }
  0x52   : > { %s1628_s26 = scalar_lea.hbm %s2010_s7, 1024  ;;  %p1634_p13 = scmp.lt.u32.totalorder %s2010_s7, %s2303_s0 }
  0x53   : > { %p1629_p12 = scmp.ne.s32.totalorder %s2010_s7, %s1628_s26  ;;  %p1635_p6 = scmp.lt.u32.totalorder %s1633_s16, %s1628_s26 }
  0x54   : > { %p1637_p3 = scmp.lt.u32.totalorder %s1628_s26, %s2010_s7 }
  0x55   : > { %p1631_p1 = pnand %p1630_p0, %p1629_p12  ;;  %p1636_p10 = por %p1635_p6, %p1634_p13 }
  0x57   : > { %p1632_p2 = pneg %p1631_p1  ;;  %p1638_p7 = por %p1637_p3, %p1636_p10 }
  0x59   : > { %p1639_p9 = pnand %p1638_p7, %p1632_p2 }
  0x5b   : > { %1642 = shalt.err (!%p1639_p9)
}
  0x5c   : > { %s1643_s14 = scalar_lea.vmem %s2012_s30, 1024  ;;  %s1826_s15 = smov [#allocation2]  }
  0x5d   : > { %p1644_p12 = scmp.ne.s32.totalorder %s2012_s30, %s1643_s14  ;;  %s1648_s10 = sshll.u32 %s1826_s15, 4  ;;  %s1649_s10 = int_to_ptr.vmem [resolvable:$false] %s1648_s10 }
  0x5e   : > { %s1650_s17 = scalar_lea.vmem %s1649_s10, 2048  ;;  %p1651_p4 = scmp.lt.s32.totalorder %s2012_s30, %s1649_s10 }
  0x5f   : > { %p1646_p1 = pnand %p1644_p12, %p1630_p0  ;;  %p1652_p13 = scmp.lt.s32.totalorder %s1650_s17, %s1643_s14 }
  0x61   : > { %p1647_p5 = pneg %p1646_p1  ;;  %p1653_p6 = por %p1652_p13, %p1651_p4 }
  0x63   : > { %p1654_p10 = pnand %p1653_p6, %p1647_p5 }
  0x65   : > { %1657 = shalt.err (!%p1654_p10)
}
  0x66   : > { %1513 = dma.hbm_to_vmem [thread:$0]  (!%p2014_p11), %s2010_s7, 1024, %s2012_s30, %s2018_s11, %s1824_s19, %s1824_s19, %s1825_s20  }
  0x67   : > { %269 = sbr.rel (%p1911_p8) target bundleno = 733 (0x2dd), region = 32  ;;  %s2052_s26 = sand.u32 (!%p1911_p8), 1, %s1812_s22  }
  0x68   : > { %s1305_s16 = sshll.u32 (!%p1911_p8), %s2052_s26, 6  ;;  %s272_s18 = scalar_lea.sflag (!%p1911_p8), [#allocation3], %s2052_s26 }
  0x69   : > { %s275_s14 = scalar_lea.vmem (!%p1911_p8), [#allocation2], %s1305_s16  ;;  %p2305_p4 = scmp.ne.s32.totalorder (!%p1911_p8), %s2297_s27, 0 }
  0x6e   : > { %1787 = dma.done.wait (%p2305_p4), %s272_s18, 1024  }
  0x6f   : > { %1789 = vsyncadd (%p2305_p4), %s272_s18, 4294966272  ;;  %p2306_p5 = scmp.eq.s32.totalorder %s1890_s25, 0 }
  0x71   : > { %1791 = dma.done.wait (%p2306_p5), [#allocation6], 512   ;;  %p2307_p11 = pmov %p2306_p5 }
  0x72   : > { %vm333_vm0 = vcmask 130048   ;;  %v331_v0 = vld [vmem:[%s275_s14] sm:$0xff]  ;;  %v332_v1 = vld [vmem:[%s275_s14 + $0x8] sm:$0xff]  ;;  %v1316_v4 = vld [vmem:[%s275_s14 + $0x10] sm:$0xff]  ;;  %s2081_s27 = sshll.u32 %s2052_s26, 5  ;;  %vm496_vm1 = vcmask 64512  }
  0x73   : > { %1793 = vsyncadd (%p2307_p11), [#allocation6], 4294966784  ;;  %v327_v2 = vld [vmem:[#allocation5] sm:$0xff]  ;;  %v1453_v3 = vpack.c.bf16 %v332_v1, %v331_v0  ;;  %v1317_v5 = vld [vmem:[%s275_s14 + $0x18] sm:$0xff]  ;;  %s312_s29 = scalar_lea.vmem [#allocation9], %s2081_s27  ;;  %s2295_s19 = smov 120  }
  0x74   : > { %1401 = vmatprep.mubr.msk.f32.mxu0 %vm333_vm0, %v327_v2  ;;  %v1461_v6 = vpack.c.bf16 %v1317_v5, %v1316_v4  ;;  %v1326_v7 = vld [vmem:[%s275_s14 + $0x20] sm:$0xff]  ;;  %v1327_v8 = vld [vmem:[%s275_s14 + $0x28] sm:$0xff]  ;;  %v329_v9 = vld [vmem:[#allocation7] sm:$0xff]  ;;  %s305_s20 = scalar_lea.vmem [#allocation8], %s2081_s27  ;;  %s1079_s7 = sshll.u32 %s312_s29, 4  ;;  %s2098_s7 = int_to_ptr.vmem [resolvable:$true] %s1079_s7 }
  0x75   : > { %1454 = vmatprep.subr.bf16.mxu0 %v1453_v3  ;;  %v330_v10 = vld [vmem:[#allocation7 + $0x8] sm:$0xff]  ;;  %v328_v11 = vld [vmem:[#allocation5 + $0x8] sm:$0xff]  ;;  %v1469_v13 = vpack.c.bf16 %v1327_v8, %v1326_v7  ;;  %v1336_v14 = vld [vmem:[%s275_s14 + $0x30] sm:$0xff]  ;;  %s1063_s30 = sshll.u32 %s305_s20, 4  ;;  %s1039_s9 = sand.u32 1, %s1890_s25   ;;  %s2100_s30 = int_to_ptr.vmem [resolvable:$true] %s1063_s30 }
  0x76   : > { %1456 = vmatpush3.bf16.msra.mxu0 %v1453_v3  ;;  %v1457_v12 = vpack.c.bf16 %v330_v10, %v329_v9  ;;  %v1337_v15 = vld [vmem:[%s275_s14 + $0x38] sm:$0xff]  ;;  %s2096_s11 = sshll.u32 %s1890_s25, 9  ;;  %s2123_s14 = scalar_lea.sflag [#allocation10], %s1039_s9 }
  0x77   : > { %1462 = vmatprep.subr.bf16.mxu0 %v1461_v6  ;;  %v1477_v16 = vpack.c.bf16 %v1337_v15, %v1336_v14  ;;  %s2110_s25 = scalar_lea.hbm %s2288_s4, %s2096_s11  ;;  %s2119_s18 = scalar_lea.hbm %s2287_s3, %s2096_s11 }
  0x78   : > { %1458 = vmatprep.subr.bf16.mxu1 %v1457_v12  ;;  %s1658_s15 = scalar_lea.vmem %s2098_s7, 512  ;;  %p2308_p0 = scmp.ne.s32.totalorder %s2302_s12, 0 }
  0x79   : > { %1402 = vmatmul.mubr.msk.f32.vlgmr.msra.gmra.mrb[0].mxu0 %vm333_vm0, %v328_v11  ;;  %1460 = vmatpush3.bf16.msra.mxu1 %v1457_v12  ;;  %p1659_p8 = scmp.ne.s32.totalorder %s2098_s7, %s1658_s15  ;;  %s1828_s10 = smov [#allocation9]  }
  0x7a   : > { %1464 = vmatpush3.bf16.msra.mxu0 %v1461_v6  ;;  %1415 = vmatprep.mubr.msk.f32.mxu0 %vm333_vm0, %v327_v2  ;;  %s1662_s0 = sshll.u32 %s1828_s10, 4  ;;  %s1663_s0 = int_to_ptr.vmem [resolvable:$false] %s1662_s0 }
  0x7b   : > { %1470 = vmatprep.subr.bf16.mxu0 %v1469_v13  ;;  %1466 = vmatprep.subr.bf16.mxu1 %v1457_v12  ;;  %p1660_p2 = pnand %p1659_p8, %p2308_p0  ;;  %p1665_p7 = scmp.lt.s32.totalorder %s2098_s7, %s1663_s0 }
  0x7d   : > { %1416 = vmatmul.mubr.msk.f32.vlgmr.msra.gmra.mrb[2].mxu0 %vm333_vm0, %v328_v11  ;;  %p1661_p3 = pneg %p1660_p2 }
  0x7e   : > { %1472 = vmatpush3.bf16.msra.mxu0 %v1469_v13  ;;  %1429 = vmatprep.mubr.msk.f32.mxu0 %vm333_vm0, %v327_v2 }
  0x7f   : > { %1478 = vmatprep.subr.bf16.mxu0 %v1477_v16 }
  0x81   : > { %1430 = vmatmul.mubr.msk.f32.vlgmr.msra.gmra.mrb[4].mxu0 %vm333_vm0, %v328_v11 }
  0x82   : > { %1480 = vmatpush3.bf16.msra.mxu0 %v1477_v16  ;;  %1443 = vmatprep.mubr.msk.f32.mxu0 %vm333_vm0, %v327_v2 }
  0x85   : > { %1444 = vmatmul.mubr.msk.f32.vlgmr.msra.gmra.mrb[6].mxu0 %vm333_vm0, %v328_v11 }
 0x14c   : > { %v1403_v17 = vpop.f32.mrb[0].mxu0 }
 0x14d   : > { %v406_v18 = vpop.f32.mrb[1].mxu0 }
 0x14e   : > { %1408 = vmatprep.mubr.msk.f32.mxu1 %vm333_vm0, %v406_v18 }
 0x14f   : > { %1409 = vmatmul.mubr.msk.f32.vlgmr.msra.gmra.mrb[0].mxu1 %vm333_vm0, %v1403_v17 }
 0x150   : > { %v1417_v19 = vpop.f32.mrb[2].mxu0  ;;  %1468 = vmatpush3.bf16.msra.mxu1 %v1457_v12 }
 0x151   : > { %v578_v20 = vpop.f32.mrb[3].mxu0  ;;  %1474 = vmatprep.subr.bf16.mxu1 %v1457_v12 }
 0x152   : > { %1422 = vmatprep.mubr.msk.f32.mxu1 %vm333_vm0, %v578_v20 }
 0x153   : > { %1423 = vmatmul.mubr.msk.f32.vlgmr.msra.gmra.mrb[2].mxu1 %vm333_vm0, %v1417_v19 }
 0x154   : > { %v1431_v21 = vpop.f32.mrb[4].mxu0  ;;  %1476 = vmatpush3.bf16.msra.mxu1 %v1457_v12 }
 0x155   : > { %v753_v22 = vpop.f32.mrb[5].mxu0  ;;  %1482 = vmatprep.subr.bf16.mxu1 %v1457_v12 }
 0x156   : > { %1436 = vmatprep.mubr.msk.f32.mxu1 %vm333_vm0, %v753_v22 }
 0x157   : > { %1437 = vmatmul.mubr.msk.f32.vlgmr.msra.gmra.mrb[4].mxu1 %vm333_vm0, %v1431_v21 }
 0x158   : > { %v1445_v23 = vpop.f32.mrb[6].mxu0  ;;  %1484 = vmatpush3.bf16.msra.mxu1 %v1457_v12 }
 0x159   : > { %v928_v24 = vpop.f32.mrb[7].mxu0 }
 0x15a   : > { %1450 = vmatprep.mubr.msk.f32.mxu1 %vm333_vm0, %v928_v24 }
 0x15b   : > { %1451 = vmatmul.mubr.msk.f32.vlgmr.msra.gmra.mrb[6].mxu1 %vm333_vm0, %v1445_v23 }
 0x222   : > { %v1410_v25 = vpop.f32.mrb[0].mxu1 }
 0x223   : > { %503 = vst.msk [vmem:[%s312_s29] sm:$0xff] %vm496_vm1, %v1410_v25  ;;  %505 = vrot.lane.b32.xlu0 %v1410_v25, %s2295_s19  ;;  %v487_v26 = vpop.f32.mrb[1].mxu1 }
 0x224   : > { %497 = vst.msk [vmem:[%s305_s20] sm:$0xff] %vm496_vm1, %v487_v26 }
 0x226   : > { %v1424_v27 = vpop.f32.mrb[2].mxu1 }
 0x227   : > { %1324 = vst.msk [vmem:[%s312_s29 + $0x8] sm:$0xff] %vm496_vm1, %v1424_v27  ;;  %499 = vrot.lane.b32.xlu0 %v487_v26, %s2295_s19  ;;  %679 = vrot.lane.b32.xlu1 %v1424_v27, %s2295_s19  ;;  %v659_v28 = vpop.f32.mrb[3].mxu1 }
 0x228   : > { %1322 = vst.msk [vmem:[%s305_s20 + $0x8] sm:$0xff] %vm496_vm1, %v659_v28 }
 0x22a   : > { %v1438_v29 = vpop.f32.mrb[4].mxu1 }
 0x22b   : > { %671 = vrot.lane.b32.xlu1 %v659_v28, %s2295_s19  ;;  %1334 = vst.msk [vmem:[%s312_s29 + $0x10] sm:$0xff] %vm496_vm1, %v1438_v29  ;;  %v834_v30 = vpop.f32.mrb[5].mxu1 }
 0x22c   : > { %1332 = vst.msk [vmem:[%s305_s20 + $0x10] sm:$0xff] %vm496_vm1, %v834_v30  ;;  %846 = vrot.lane.b32.xlu0 %v834_v30, %s2295_s19 }
 0x22e   : > { %v2104_v31 = vpop.f32.mrb[6].mxu1 }
 0x22f   : > { %854 = vrot.lane.b32.xlu1 %v1438_v29, %s2295_s19  ;;  %1344 = vst.msk [vmem:[%s312_s29 + $0x18] sm:$0xff] %vm496_vm1, %v2104_v31  ;;  %v1009_v32 = vpop.f32.mrb[7].mxu1  ;;  %s1664_s29 = scalar_lea.vmem %s1663_s0, 1024 }
 0x230   : > { %1342 = vst.msk [vmem:[%s305_s20 + $0x18] sm:$0xff] %vm496_vm1, %v1009_v32  ;;  %1021 = vrot.lane.b32.xlu0 %v1009_v32, %s2295_s19  ;;  %p1666_p9 = scmp.lt.s32.totalorder %s1664_s29, %s1658_s15 }
 0x232   : > { %p1667_p12 = por %p1666_p9, %p1665_p7 }
 0x234   : > { %p1668_p1 = pnand %p1667_p12, %p1661_p3 }
 0x236   : > { %1671 = shalt.err (!%p1668_p1)
}
 0x237   : > { %s1672_s20 = scalar_lea.hbm %s2110_s25, 512  ;;  %s1676_s16 = scalar_lea.hbm %s2288_s4, 1024 }
 0x238   : > { %p1673_p13 = scmp.ne.s32.totalorder %s2110_s25, %s1672_s20  ;;  %p1677_p4 = scmp.lt.u32.totalorder %s2110_s25, %s2288_s4 }
 0x239   : > { %p1678_p5 = scmp.lt.u32.totalorder %s1676_s16, %s1672_s20  ;;  %p1680_p8 = scmp.lt.u32.totalorder %s1672_s20, %s2110_s25 }
 0x23a   : > { %p1674_p6 = pnand %p1673_p13, %p2308_p0 }
 0x23b   : > { %p1679_p11 = por %p1678_p5, %p1677_p4 }
 0x23c   : > { %p1675_p10 = pneg %p1674_p6 }
 0x23d   : > { %p1681_p2 = por %p1680_p8, %p1679_p11 }
 0x23f   : > { %p1682_p3 = pnand %p1681_p2, %p1675_p10 }
 0x241   : > { %1685 = shalt.err (!%p1682_p3)
}
 0x242   : > { %s1829_s15 = smov 128   ;;  %s1830_s29 = smov 8  }
 0x243   : > { %1496 = dma.vmem_to_hbm [thread:$0]  (%p2308_p0), %s2098_s7, 512, %s2110_s25, %s2123_s14, %s1829_s15, %s1829_s15, %s1830_s29  }
 0x244   : > { %s1035_s20 = scalar_lea.sflag [#allocation4], %s2052_s26  ;;  %s1686_s9 = scalar_lea.vmem %s2100_s30, 512 }
 0x245   : > { %p1687_p7 = scmp.ne.s32.totalorder %s2100_s30, %s1686_s9  ;;  %s1831_s17 = smov [#allocation8]  }
 0x246   : > { %s1690_s16 = sshll.u32 %s1831_s17, 4  ;;  %s1691_s16 = int_to_ptr.vmem [resolvable:$false] %s1690_s16 }
 0x247   : > { %p1688_p9 = pnand %p1687_p7, %p2308_p0  ;;  %s1692_s10 = scalar_lea.vmem %s1691_s16, 1024 }
 0x248   : > { %p1693_p1 = scmp.lt.s32.totalorder %s2100_s30, %s1691_s16  ;;  %p1694_p13 = scmp.lt.s32.totalorder %s1692_s10, %s1686_s9 }
 0x249   : > { %p1689_p12 = pneg %p1688_p9 }
 0x24a   : > { %p1695_p6 = por %p1694_p13, %p1693_p1 }
 0x24c   : > { %p1696_p10 = pnand %p1695_p6, %p1689_p12 }
 0x24e   : > { %1699 = shalt.err (!%p1696_p10)
}
 0x24f   : > { %s1700_s7 = scalar_lea.hbm %s2119_s18, 512  ;;  %s1704_s17 = scalar_lea.hbm %s2287_s3, 1024 }
 0x250   : > { %p1701_p4 = scmp.ne.s32.totalorder %s2119_s18, %s1700_s7  ;;  %p1705_p8 = scmp.lt.u32.totalorder %s2119_s18, %s2287_s3 }
 0x251   : > { %p1706_p2 = scmp.lt.u32.totalorder %s1704_s17, %s1700_s7  ;;  %p1708_p7 = scmp.lt.u32.totalorder %s1700_s7, %s2119_s18 }
 0x252   : > { %p1702_p5 = pnand %p1701_p4, %p2308_p0 }
 0x253   : > { %p1707_p3 = por %p1706_p2, %p1705_p8 }
 0x254   : > { %p1703_p11 = pneg %p1702_p5 }
 0x255   : > { %p1709_p9 = por %p1708_p7, %p1707_p3 }
 0x257   : > { %p1710_p12 = pnand %p1709_p9, %p1703_p11 }
 0x259   : > { %1713 = shalt.err (!%p1710_p12)
}
 0x25a   : > { %1495 = dma.vmem_to_hbm [thread:$0]  (%p2308_p0), %s2100_s30, 512, %s2119_s18, %s1035_s20, %s1829_s15, %s1829_s15, %s1830_s29  }
 0x25b   : > { %s2309_s19 = smov 120   ;;  %s2180_s9 = scalar_lea.vmem [#allocation12], %s2081_s27 }
 0x25c   : > { %1029 = vrot.lane.b32.xlu1 %v2104_v31, %s2309_s19  ;;  %s319_s10 = scalar_lea.vmem [#allocation11], %s2081_s27  ;;  %s1111_s18 = sshll.u32 %s2180_s9, 4  ;;  %s2199_s18 = int_to_ptr.vmem [resolvable:$true] %s1111_s18 }
 0x25d   : > { %s1095_s30 = sshll.u32 %s319_s10, 4  ;;  %s2197_s7 = scalar_lea.hbm %s2289_s5, %s2096_s11  ;;  %s2191_s30 = int_to_ptr.vmem [resolvable:$true] %s1095_s30 }
 0x25e   : > { %s2208_s17 = scalar_lea.hbm %s2290_s6, %s2096_s11  ;;  %s1714_s16 = scalar_lea.vmem %s2191_s30, 512 }
 0x25f   : > { %p1715_p1 = scmp.ne.s32.totalorder %s2191_s30, %s1714_s16  ;;  %s1832_s19 = smov [#allocation11]  }
 0x260   : > { %s1718_s27 = sshll.u32 %s1832_s19, 4  ;;  %s1719_s27 = int_to_ptr.vmem [resolvable:$false] %s1718_s27 }
 0x261   : > { %p1716_p13 = pnand %p1715_p1, %p2308_p0  ;;  %s1720_s20 = scalar_lea.vmem %s1719_s27, 1024 }
 0x262   : > { %p1721_p10 = scmp.lt.s32.totalorder %s2191_s30, %s1719_s27  ;;  %p1722_p4 = scmp.lt.s32.totalorder %s1720_s20, %s1714_s16 }
 0x263   : > { %p1717_p6 = pneg %p1716_p13 }
 0x264   : > { %p1723_p5 = por %p1722_p4, %p1721_p10 }
 0x266   : > { %p1724_p11 = pnand %p1723_p5, %p1717_p6 }
 0x295   : > { %v506_v33 = vpop.permute.xlu0 %505 }
 0x296   : > { %508 = vst.msk [vmem:[%s2180_s9] sm:$0xff] %vm496_vm1, %v506_v33 }
 0x299   : > { %v500_v34 = vpop.permute.xlu0 %499  ;;  %v680_v35 = vpop.permute.xlu1 %679 }
 0x29a   : > { %502 = vst.msk [vmem:[%s319_s10] sm:$0xff] %vm496_vm1, %v500_v34  ;;  %1325 = vst.msk [vmem:[%s2180_s9 + $0x8] sm:$0xff] %vm496_vm1, %v680_v35 }
 0x29d   : > { %v672_v36 = vpop.permute.xlu1 %671 }
 0x29e   : > { %1323 = vst.msk [vmem:[%s319_s10 + $0x8] sm:$0xff] %vm496_vm1, %v672_v36  ;;  %v847_v37 = vpop.permute.xlu0 %846 }
 0x29f   : > { %1333 = vst.msk [vmem:[%s319_s10 + $0x10] sm:$0xff] %vm496_vm1, %v847_v37 }
 0x2a1   : > { %v855_v38 = vpop.permute.xlu1 %854 }
 0x2a2   : > { %1335 = vst.msk [vmem:[%s2180_s9 + $0x10] sm:$0xff] %vm496_vm1, %v855_v38  ;;  %v1022_v39 = vpop.permute.xlu0 %1021 }
 0x2a3   : > { %1343 = vst.msk [vmem:[%s319_s10 + $0x18] sm:$0xff] %vm496_vm1, %v1022_v39 }
 0x2a4   : > { %1727 = shalt.err (!%p1724_p11)
}
 0x2a5   : > { %s1728_s11 = scalar_lea.hbm %s2197_s7, 512  ;;  %s1732_s0 = scalar_lea.hbm %s2289_s5, 1024 }
 0x2a6   : > { %p1729_p8 = scmp.ne.s32.totalorder %s2197_s7, %s1728_s11  ;;  %p1733_p7 = scmp.lt.u32.totalorder %s2197_s7, %s2289_s5 }
 0x2a7   : > { %p1734_p9 = scmp.lt.u32.totalorder %s1732_s0, %s1728_s11  ;;  %p1736_p1 = scmp.lt.u32.totalorder %s1728_s11, %s2197_s7 }
 0x2a8   : > { %p1730_p2 = pnand %p1729_p8, %p2308_p0 }
 0x2a9   : > { %p1735_p12 = por %p1734_p9, %p1733_p7 }
 0x2aa   : > { %p1731_p3 = pneg %p1730_p2 }
 0x2ab   : > { %p1737_p13 = por %p1736_p1, %p1735_p12 }
 0x2ad   : > { %p1738_p6 = pnand %p1737_p13, %p1731_p3 }
 0x2af   : > { %1741 = shalt.err (!%p1738_p6)
}
 0x2b0   : > { %1497 = dma.vmem_to_hbm [thread:$0]  (%p2308_p0), %s2191_s30, 512, %s2197_s7, %s2123_s14, %s1829_s15, %s1829_s15, %s1830_s29  }
 0x2b1   : > { %s1050_s16 = scalar_lea.sflag [#allocation13], %s2052_s26  ;;  %s1742_s20 = scalar_lea.vmem %s2199_s18, 512 }
 0x2b2   : > { %p1743_p10 = scmp.ne.s32.totalorder %s2199_s18, %s1742_s20  ;;  %s1833_s11 = smov [#allocation12]  }
 0x2b3   : > { %s1746_s10 = sshll.u32 %s1833_s11, 4  ;;  %s1747_s10 = int_to_ptr.vmem [resolvable:$false] %s1746_s10 }
 0x2b4   : > { %p1744_p4 = pnand %p1743_p10, %p2308_p0  ;;  %s1748_s25 = scalar_lea.vmem %s1747_s10, 1024 }
 0x2b5   : > { %p1749_p11 = scmp.lt.s32.totalorder %s2199_s18, %s1747_s10  ;;  %p1750_p8 = scmp.lt.s32.totalorder %s1748_s25, %s1742_s20 }
 0x2b6   : > { %p1745_p5 = pneg %p1744_p4 }
 0x2b7   : > { %p1751_p2 = por %p1750_p8, %p1749_p11 }
 0x2b9   : > { %p1752_p3 = pnand %p1751_p2, %p1745_p5 }
 0x2ce   : > { %v1030_v40 = vpop.permute.xlu1 %1029 }
 0x2cf   : > { %1345 = vst.msk [vmem:[%s2180_s9 + $0x18] sm:$0xff] %vm496_vm1, %v1030_v40 }
 0x2d0   : > { %1755 = shalt.err (!%p1752_p3)
}
 0x2d1   : > { %s1756_s14 = scalar_lea.hbm %s2208_s17, 512  ;;  %s1760_s7 = scalar_lea.hbm %s2290_s6, 1024 }
 0x2d2   : > { %p1757_p7 = scmp.ne.s32.totalorder %s2208_s17, %s1756_s14  ;;  %p1761_p1 = scmp.lt.u32.totalorder %s2208_s17, %s2290_s6 }
 0x2d3   : > { %p1762_p13 = scmp.lt.u32.totalorder %s1760_s7, %s1756_s14  ;;  %p1764_p10 = scmp.lt.u32.totalorder %s1756_s14, %s2208_s17 }
 0x2d4   : > { %p1758_p9 = pnand %p1757_p7, %p2308_p0 }
 0x2d5   : > { %p1763_p6 = por %p1762_p13, %p1761_p1 }
 0x2d6   : > { %p1759_p12 = pneg %p1758_p9 }
 0x2d7   : > { %p1765_p4 = por %p1764_p10, %p1763_p6 }
 0x2d9   : > { %p1766_p5 = pnand %p1765_p4, %p1759_p12 }
 0x2db   : > { %1769 = shalt.err (!%p1766_p5)
}
 0x2dc   : > { %1498 = dma.vmem_to_hbm [thread:$0]  (%p2308_p0), %s2199_s18, 512, %s2208_s17, %s1050_s16, %s1829_s15, %s1829_s15, %s1830_s29  }
 0x2dd PF: > { %s1126_s27 = sand.u32 1, %s1808_s21   ;;  %p2310_p11 = scmp.ne.s32.totalorder %s2298_s28, 0 }
 0x2de   : > { %p2311_p8 = scmp.ge.s32.totalorder %s1820_s24, 2  ;;  %s1127_s20 = scalar_lea.sflag [#allocation4], %s1126_s27 }
 0x2e0   : > { %p1515_p2 = pnand %p2311_p8, %p2310_p11 }
 0x2e2   : > { %1795 = dma.done.wait (!%p1515_p2), %s1127_s20, 512  }
 0x2e3   : > { %1797 = vsyncadd (!%p1515_p2), %s1127_s20, 4294966784  ;;  %s2312_s12 = sadd.s32 4294967294, %s1820_s24  }
 0x2e4   : > { %s1135_s11 = sand.u32 1, %s2312_s12  }
 0x2e5   : > { %s1136_s10 = scalar_lea.sflag [#allocation10], %s1135_s11 }
 0x2e6   : > { %1799 = dma.done.wait (!%p1515_p2), %s1136_s10, 1024  }
 0x2e7   : > { %1801 = vsyncadd (!%p1515_p2), %s1136_s10, 4294966272  ;;  %s1154_s26 = scalar_lea.sflag [#allocation13], %s1126_s27 }
 0x2e8   : > { %1803 = dma.done.wait (!%p1515_p2), %s1154_s26, 512  }
 0x2e9   : > { %1805 = vsyncadd (!%p1515_p2), %s1154_s26, 4294966784  ;;  %p27_p0 = scmp.ge.s32.totalorder %s1987_s8, 4   ;;  %s2313_s21 = smov %s1812_s22 }
 0x2ea   : > { %s2314_s22 = smov %s1816_s23  ;;  %s2315_s23 = smov %s2003_s13 }
 0x2eb   : > { %s2316_s24 = smov %s1987_s8  ;;  %29 = sbr.rel (!%p27_p0) target bundleno = 12 (0xc), region = 149 }
 0x2f2   :  { %1159 = vsyncpa [#allocation3], 1 }
 0x2f3   :  { %1161 = vsyncpa [#allocation3 + $0x1], 1 }
 0x2f4   :  { %1162 = vsyncpa [#allocation6], 1 }
 0x2f5   :  { %1163 = vsyncpa [#allocation4], 1 }
 0x2f6   :  { %1165 = vsyncpa [#allocation4 + $0x1], 1 }
 0x2f7   :  { %1166 = vsyncpa [#allocation10], 1 }
 0x2f8   :  { %1168 = vsyncpa [#allocation10 + $0x1], 1 }
 0x2f9   :  { %1169 = vsyncpa [#allocation13], 1 }
 0x2fa   :  { %1171 = vsyncpa [#allocation13 + $0x1], 1 }

</bundles_post_ra>
